<compile_context>
chip_gen: v7x
topology: tpu7x:2x2x1
jax: 0.10.0
libtpu: 0.0.40
codegen_flags: <defaults>
</compile_context>

<pallas_src>
import jax
import jax.numpy as jnp
import numpy as np
from jax import lax
from jax.experimental import pallas as pl
from jax.experimental.pallas import tpu as pltpu


# ----------------------------- Pallas kernel --------------------------------

def _make_kernel(BB, T, L, Cin_p, off):
    """Fused per-block kernel with static slab offsets baked in."""
    T2, T4 = T - 2, T - 4
    M = BB * T                       # flat conv rows per grid step
    n_rest = 128 - 2 * L             # lanes to the right of [mu|logvar]

    o_w10, o_w11, o_w12 = off["w1_0"], off["w1_1"], off["w1_2"]
    o_w201, o_w22 = off["w2_01"], off["w2_2"]
    o_we1, o_we2 = off["we1"], off["we2"]
    o_wmulv, o_wf1, o_wf2 = off["wmulv"], off["wf1"], off["wf2"]
    o_b = off["bias"]

    def kernel(x_ref, eps_ref, w_ref, o_ref):
        f32 = jnp.float32
        relu = lambda v: jnp.maximum(v, 0.0)
        dot = lambda a, b: jnp.dot(a, b, preferred_element_type=f32)

        def shift_up(v, n):
            # out[r] = v[r + n]; wrapped rows only land on masked-out rows.
            return jnp.roll(v, -n, axis=0)

        x = x_ref[...]                                            # (M, Cin_p)

        # ---- conv1: 3 per-tap matmuls on flat rows + shifted-row adds ----
        y0 = dot(x, w_ref[o_w10:o_w10 + Cin_p, :])
        y1 = dot(x, w_ref[o_w11:o_w11 + Cin_p, :])
        y2 = dot(x, w_ref[o_w12:o_w12 + Cin_p, :])
        h1 = relu(y0 + shift_up(y1, 1) + shift_up(y2, 2)
                  + w_ref[o_b + 0:o_b + 1, :])                    # (M, 128)

        # ---- conv2: taps 0|1 lane-packed into one N=128 matmul, + tap 2 ----
        s01 = dot(h1, w_ref[o_w201:o_w201 + 128, :])              # (M, 128)
        s2 = dot(h1, w_ref[o_w22:o_w22 + 128, 0:64])              # (M, 64)
        a = relu(s01[:, 0:64] + shift_up(s01[:, 64:128], 1) + shift_up(s2, 2)
                 + w_ref[o_b + 1:o_b + 2, 0:64])                  # (M, 64)

        # ---- AdaptiveAvgPool1d(1) + per-batch gather as ONE small matmul ----
        # P[i, i*T + t] = 1/T4 for t < T4 else 0  (also masks invalid rows).
        col = lax.broadcasted_iota(jnp.int32, (BB, M), 1)
        row = lax.broadcasted_iota(jnp.int32, (BB, M), 0)
        t = col - row * T
        pool = jnp.where((t >= 0) & (t < T4), 1.0 / T4, 0.0).astype(f32)
        h0 = dot(pool, a)                                         # (BB, 64)

        # ---- encoder MLP (Dropout(0.2) = identity at inference) ----
        e1 = relu(dot(h0, w_ref[o_we1:o_we1 + 64, :])
                  + w_ref[o_b + 2:o_b + 3, :])                    # (BB, 128)
        e2 = relu(dot(e1, w_ref[o_we2:o_we2 + 128, 0:64])
                  + w_ref[o_b + 3:o_b + 4, 0:64])                 # (BB, 64)

        # ---- fused fc_mu | fc_logvar: one (64, 2L) matmul ----
        mulv = (dot(e2, w_ref[o_wmulv:o_wmulv + 64, 0:2 * L])
                + w_ref[o_b + 4:o_b + 5, 0:2 * L])                # (BB, 2L)
        mu = mulv[:, 0:L]
        logvar = mulv[:, L:2 * L]

        # ---- reparameterize: z = mu + eps * exp(0.5 * logvar) ----
        eps = eps_ref[...][:, 0:L]                                # (BB, L)
        z = mu + eps * jnp.exp(0.5 * logvar)

        # ---- forecast head (pred computed on zero-padded lanes so it already
        #      occupies the packed-output tail) ----
        f1 = relu(dot(z, w_ref[o_wf1:o_wf1 + L, 0:32])
                  + w_ref[o_b + 5:o_b + 6, 0:32])                 # (BB, 32)
        pred_pad = (dot(f1, w_ref[o_wf2:o_wf2 + 32, 0:n_rest])
                    + w_ref[o_b + 6:o_b + 7, 0:n_rest])           # (BB, 128-2L)

        # ---- single unmasked full-width store: [mu | logvar | pred | 0...] ----
        o_ref[...] = jnp.concatenate([mulv, pred_pad], axis=-1)   # (BB, 128)

    return kernel


# ------------------------------ parameters -----------------------------------

def init_params(key, input_dim=5, latent_dim=16):
    ks = jax.random.split(key, 16)

    def u(k, shape, fan_in):
        bound = 1.0 / np.sqrt(fan_in)
        return jax.random.uniform(k, shape, jnp.float32, -bound, bound)

    return {
        # Conv1d(input_dim, 128, k=3): weight (128, Cin, 3), bias (128,)
        "conv1_w": u(ks[0], (128, input_dim, 3), input_dim * 3),
        "conv1_b": u(ks[1], (128,), input_dim * 3),
        # Conv1d(128, 64, k=3)
        "conv2_w": u(ks[2], (64, 128, 3), 128 * 3),
        "conv2_b": u(ks[3], (64,), 128 * 3),
        # encoder Linear(64,128), Linear(128,64)
        "enc1_w": u(ks[4], (128, 64), 64), "enc1_b": u(ks[5], (128,), 64),
        "enc2_w": u(ks[6], (64, 128), 128), "enc2_b": u(ks[7], (64,), 128),
        # fc_mu / fc_logvar Linear(64, latent_dim)
        "mu_w": u(ks[8], (latent_dim, 64), 64), "mu_b": u(ks[9], (latent_dim,), 64),
        "lv_w": u(ks[10], (latent_dim, 64), 64), "lv_b": u(ks[11], (latent_dim,), 64),
        # forecast head Linear(latent_dim,32), Linear(32,1)
        "f1_w": u(ks[12], (32, latent_dim), latent_dim),
        "f1_b": u(ks[13], (32,), latent_dim),
        "f2_w": u(ks[14], (1, 32), 32), "f2_b": u(ks[15], (1,), 32),
    }


def prepare_params(params, input_dim=5, latent_dim=16):
    """One-time packing: transposes + a single weight+bias slab (hoisted out
    of the hot path)."""
    f32 = jnp.float32
    L = latent_dim
    Cin_p = 8                                   # pad conv1 contraction dim

    def lane_pad(w, width=128):
        return jnp.pad(w, ((0, 0), (0, width - w.shape[1])))

    def row_pad(w, mult=8):
        r = w.shape[0]
        rp = ((r + mult - 1) // mult) * mult
        return jnp.pad(w, ((0, rp - r), (0, 0)))

    # conv1 per-tap weights: (Cin, 128) row-padded to (Cin_p, 128)
    w1 = params["conv1_w"]                                    # (128, Cin, 3)
    w1_taps = [jnp.pad(jnp.transpose(w1[:, :, k], (1, 0)),
                       ((0, Cin_p - input_dim), (0, 0))) for k in range(3)]

    # conv2 per-tap weights: (128, 64); pack tap0|tap1 along lanes
    w2 = params["conv2_w"]                                    # (64, 128, 3)
    w2_t = [jnp.transpose(w2[:, :, k], (1, 0)) for k in range(3)]
    w2_01 = jnp.concatenate([w2_t[0], w2_t[1]], axis=1)       # (128, 128)
    w2_2 = lane_pad(w2_t[2])                                  # (128, 128)

    we1 = params["enc1_w"].T                                  # (64, 128)
    we2 = lane_pad(params["enc2_w"].T)                        # (128, 128)
    wmulv = lane_pad(jnp.concatenate([params["mu_w"].T, params["lv_w"].T], axis=1))
    wf1 = lane_pad(params["f1_w"].T)                          # (L, 128)
    wf2 = lane_pad(params["f2_w"].T)                          # (32, 128)

    def brow(b):
        b = b.reshape(1, -1)
        return jnp.pad(b, ((0, 0), (0, 128 - b.shape[1])))

    bias = jnp.concatenate([
        brow(params["conv1_b"]), brow(params["conv2_b"]),
        brow(params["enc1_b"]), brow(params["enc2_b"]),
        brow(jnp.concatenate([params["mu_b"], params["lv_b"]])),
        brow(params["f1_b"]), brow(params["f2_b"]),
        jnp.zeros((1, 128), f32),
    ], axis=0)                                                # (8, 128)

    names = ["w1_0", "w1_1", "w1_2", "w2_01", "w2_2", "we1", "we2",
             "wmulv", "wf1", "wf2", "bias"]
    pieces = [row_pad(p) for p in (w1_taps + [w2_01, w2_2, we1, we2,
                                              wmulv, wf1, wf2, bias])]
    offsets, off = {}, 0
    for n, p in zip(names, pieces):
        offsets[n] = off
        off += p.shape[0]
    wslab = jnp.concatenate(pieces, axis=0).astype(f32)       # (592, 128)

    return {"wslab": wslab, "offsets": offsets, "cin_p": Cin_p,
            "latent_dim": L, "input_dim": input_dim}


# ------------------------------ JAX wrapper ---------------------------------

def cnn_vae_forward(x, prep, eps, block_b=8):
    """x: (B, T, Cin) float32, eps: (B, latent_dim) float32."""
    B, T, Cin = x.shape
    L = eps.shape[1]
    Cin_p = prep["cin_p"]
    f32 = jnp.float32

    # BB = batch elements per grid step (>=8 for unmasked full-vreg output
    # stores; raise it for large B, keep >=2 grid steps on v7x megacore).
    BB = block_b
    B_pad = ((B + BB - 1) // BB) * BB

    xf = jnp.pad(x.astype(f32), ((0, B_pad - B), (0, 0), (0, Cin_p - Cin)))
    xf = xf.reshape(B_pad * T, Cin_p)                          # flat conv rows
    epsl = jnp.pad(eps.astype(f32), ((0, B_pad - B), (0, 128 - L)))

    kernel = _make_kernel(BB, T, L, Cin_p, prep["offsets"])
    wslab = prep["wslab"]

    out = pl.pallas_call(
        kernel,
        grid=(B_pad // BB,),
        out_shape=jax.ShapeDtypeStruct((B_pad, 128), f32),
        in_specs=[
            pl.BlockSpec((BB * T, Cin_p), lambda b: (b, 0)),   # raw x rows
            pl.BlockSpec((BB, 128), lambda b: (b, 0)),         # lane-dense eps
            pl.BlockSpec(wslab.shape, lambda b: (0, 0)),       # resident weights+biases
        ],
        out_specs=pl.BlockSpec((BB, 128), lambda b: (b, 0)),   # packed rows
        compiler_params=pltpu.CompilerParams(
            dimension_semantics=("parallel",)),
    )(xf, epsl, wslab)

    mu = out[:B, 0:L]
    logvar = out[:B, L:2 * L]
    pred = out[:B, 2 * L:2 * L + 1]
    return pred, mu, logvar


# ----------------------- pure-JAX reference (for checking) ------------------

def _im2col(x_btc, k):
    T = x_btc.shape[1]
    return jnp.concatenate([x_btc[:, i:T - k + 1 + i, :] for i in range(k)], axis=-1)


def reference_forward(x, params, eps):
    B, T, Cin = x.shape
    relu = lambda v: jnp.maximum(v, 0.0)
    w1m = jnp.transpose(params["conv1_w"], (2, 1, 0)).reshape(3 * Cin, 128)
    h1 = relu(_im2col(x, 3) @ w1m + params["conv1_b"])               # (B,T-2,128)
    w2m = jnp.transpose(params["conv2_w"], (2, 1, 0)).reshape(3 * 128, 64)
    h2 = relu(_im2col(h1, 3) @ w2m + params["conv2_b"])              # (B,T-4,64)
    h0 = jnp.mean(h2, axis=1)                                        # (B,64)
    e1 = relu(h0 @ params["enc1_w"].T + params["enc1_b"])
    e2 = relu(e1 @ params["enc2_w"].T + params["enc2_b"])
    mu = e2 @ params["mu_w"].T + params["mu_b"]
    logvar = e2 @ params["lv_w"].T + params["lv_b"]
    z = mu + eps * jnp.exp(0.5 * logvar)
    f1 = relu(z @ params["f1_w"].T + params["f1_b"])
    pred = f1 @ params["f2_w"].T + params["f2_b"]
    return pred, mu, logvar


# --------------------------------- main --------------------------------------

if __name__ == "__main__":
    B, T, Cin, L = 2, 8, 5, 16
    key = jax.random.PRNGKey(0)
    kx, keps, kp = jax.random.split(key, 3)

    x = jax.random.normal(kx, (B, T, Cin), jnp.float32)
    eps = jax.random.normal(keps, (B, L), jnp.float32)   # torch.randn_like eps
    params = init_params(kp, input_dim=Cin, latent_dim=L)
    prep = prepare_params(params, input_dim=Cin, latent_dim=L)

    pred, mu, logvar = jax.block_until_ready(cnn_vae_forward(x, prep, eps))
    pred_r, mu_r, lv_r = reference_forward(x, params, eps)

    assert pred.shape == (B, 1) and mu.shape == (B, L) and logvar.shape == (B, L)
    np.testing.assert_allclose(np.asarray(pred), np.asarray(pred_r), rtol=1e-4, atol=1e-5)
    np.testing.assert_allclose(np.asarray(mu), np.asarray(mu_r), rtol=1e-4, atol=1e-5)
    np.testing.assert_allclose(np.asarray(logvar), np.asarray(lv_r), rtol=1e-4, atol=1e-5)
    print("KERNEL_OK")
</pallas_src>

<mosaic_0001>
module attributes {stable_mosaic.version = 11 : i64} {
  func.func @kernel(%arg0: i32, %arg1: memref<64x8xf32, #tpu.memory_space<vmem>>, %arg2: memref<8x128xf32, #tpu.memory_space<vmem>>, %arg3: memref<592x128xf32, #tpu.memory_space<vmem>>, %arg4: memref<8x128xf32, #tpu.memory_space<vmem>>) attributes {dimension_semantics = [#tpu.dimension_semantics<parallel>], iteration_bounds = array<i64: 1>, scalar_prefetch = 0 : i64, scratch_operands = 0 : i64, tpu.core_type = #tpu.core_type<tc>, window_params = [{transform_indices = @transform_0, window_bounds = array<i64: 64, 8>}, {transform_indices = @transform_1, window_bounds = array<i64: 8, 128>}, {pipeline_mode = #tpu.pipeline_mode<synchronous>, transform_indices = @transform_2, window_bounds = array<i64: 592, 128>}, {transform_indices = @transform_3, window_bounds = array<i64: 8, 128>}]} {
    %c0 = arith.constant 0 : index
    %c0_0 = arith.constant 0 : index
    %0 = vector.load %arg1[%c0, %c0_0] : memref<64x8xf32, #tpu.memory_space<vmem>>, vector<64x8xf32>
    %c0_1 = arith.constant 0 : index
    %c0_2 = arith.constant 0 : index
    %1 = vector.load %arg3[%c0_1, %c0_2] : memref<592x128xf32, #tpu.memory_space<vmem>>, vector<8x128xf32>
    %cst = arith.constant dense<0.000000e+00> : vector<64x128xf32>
    %2 = tpu.matmul %0, %1, %cst {dimension_numbers = #tpu.dot_dimension_numbers<[1], [0], [0], [1], [0, 0, 1, 1], [], []>} : vector<64x8xf32>, vector<8x128xf32>, vector<64x128xf32> -> vector<64x128xf32>
    %c8 = arith.constant 8 : index
    %c0_3 = arith.constant 0 : index
    %3 = vector.load %arg3[%c8, %c0_3] : memref<592x128xf32, #tpu.memory_space<vmem>>, vector<8x128xf32>
    %cst_4 = arith.constant dense<0.000000e+00> : vector<64x128xf32>
    %4 = tpu.matmul %0, %3, %cst_4 {dimension_numbers = #tpu.dot_dimension_numbers<[1], [0], [0], [1], [0, 0, 1, 1], [], []>} : vector<64x8xf32>, vector<8x128xf32>, vector<64x128xf32> -> vector<64x128xf32>
    %c16 = arith.constant 16 : index
    %c0_5 = arith.constant 0 : index
    %5 = vector.load %arg3[%c16, %c0_5] : memref<592x128xf32, #tpu.memory_space<vmem>>, vector<8x128xf32>
    %cst_6 = arith.constant dense<0.000000e+00> : vector<64x128xf32>
    %6 = tpu.matmul %0, %5, %cst_6 {dimension_numbers = #tpu.dot_dimension_numbers<[1], [0], [0], [1], [0, 0, 1, 1], [], []>} : vector<64x8xf32>, vector<8x128xf32>, vector<64x128xf32> -> vector<64x128xf32>
    %7 = vector.extract_strided_slice %4 {offsets = [1, 0], sizes = [63, 128], strides = [1, 1]} : vector<64x128xf32> to vector<63x128xf32>
    %8 = vector.extract_strided_slice %4 {offsets = [0, 0], sizes = [1, 128], strides = [1, 1]} : vector<64x128xf32> to vector<1x128xf32>
    %9 = tpu.concatenate %7, %8 in 0 : vector<63x128xf32>, vector<1x128xf32> -> vector<64x128xf32>
    %10 = arith.addf %2, %9 : vector<64x128xf32>
    %11 = vector.extract_strided_slice %6 {offsets = [2, 0], sizes = [62, 128], strides = [1, 1]} : vector<64x128xf32> to vector<62x128xf32>
    %12 = vector.extract_strided_slice %6 {offsets = [0, 0], sizes = [2, 128], strides = [1, 1]} : vector<64x128xf32> to vector<2x128xf32>
    %13 = tpu.concatenate %11, %12 in 0 : vector<62x128xf32>, vector<2x128xf32> -> vector<64x128xf32>
    %14 = arith.addf %10, %13 : vector<64x128xf32>
    %c584 = arith.constant 584 : index
    %c0_7 = arith.constant 0 : index
    %15 = vector.load %arg3[%c584, %c0_7] : memref<592x128xf32, #tpu.memory_space<vmem>>, vector<1x128xf32>
    %16 = vector.broadcast %15 : vector<1x128xf32> to vector<64x128xf32>
    %17 = arith.addf %14, %16 : vector<64x128xf32>
    %cst_8 = arith.constant 0.000000e+00 : f32
    %18 = vector.broadcast %cst_8 : f32 to vector<64x128xf32>
    %19 = arith.maximumf %17, %18 : vector<64x128xf32>
    %c24 = arith.constant 24 : index
    %c0_9 = arith.constant 0 : index
    %20 = vector.load %arg3[%c24, %c0_9] : memref<592x128xf32, #tpu.memory_space<vmem>>, vector<128x128xf32>
    %cst_10 = arith.constant dense<0.000000e+00> : vector<64x128xf32>
    %21 = tpu.matmul %19, %20, %cst_10 {dimension_numbers = #tpu.dot_dimension_numbers<[1], [0], [0], [1], [0, 0, 1, 1], [], []>} : vector<64x128xf32>, vector<128x128xf32>, vector<64x128xf32> -> vector<64x128xf32>
    %c152 = arith.constant 152 : index
    %c0_11 = arith.constant 0 : index
    %22 = vector.load %arg3[%c152, %c0_11] : memref<592x128xf32, #tpu.memory_space<vmem>>, vector<128x64xf32>
    %cst_12 = arith.constant dense<0.000000e+00> : vector<64x64xf32>
    %23 = tpu.matmul %19, %22, %cst_12 {dimension_numbers = #tpu.dot_dimension_numbers<[1], [0], [0], [1], [0, 0, 1, 1], [], []>} : vector<64x128xf32>, vector<128x64xf32>, vector<64x64xf32> -> vector<64x64xf32>
    %24 = vector.extract_strided_slice %21 {offsets = [0, 0], sizes = [64, 64], strides = [1, 1]} : vector<64x128xf32> to vector<64x64xf32>
    %25 = vector.extract_strided_slice %21 {offsets = [0, 64], sizes = [64, 64], strides = [1, 1]} : vector<64x128xf32> to vector<64x64xf32>
    %26 = vector.extract_strided_slice %25 {offsets = [1, 0], sizes = [63, 64], strides = [1, 1]} : vector<64x64xf32> to vector<63x64xf32>
    %27 = vector.extract_strided_slice %25 {offsets = [0, 0], sizes = [1, 64], strides = [1, 1]} : vector<64x64xf32> to vector<1x64xf32>
    %28 = tpu.concatenate %26, %27 in 0 : vector<63x64xf32>, vector<1x64xf32> -> vector<64x64xf32>
    %29 = arith.addf %24, %28 : vector<64x64xf32>
    %30 = vector.extract_strided_slice %23 {offsets = [2, 0], sizes = [62, 64], strides = [1, 1]} : vector<64x64xf32> to vector<62x64xf32>
    %31 = vector.extract_strided_slice %23 {offsets = [0, 0], sizes = [2, 64], strides = [1, 1]} : vector<64x64xf32> to vector<2x64xf32>
    %32 = tpu.concatenate %30, %31 in 0 : vector<62x64xf32>, vector<2x64xf32> -> vector<64x64xf32>
    %33 = arith.addf %29, %32 : vector<64x64xf32>
    %c585 = arith.constant 585 : index
    %c0_13 = arith.constant 0 : index
    %34 = vector.load %arg3[%c585, %c0_13] : memref<592x128xf32, #tpu.memory_space<vmem>>, vector<1x64xf32>
    %35 = vector.broadcast %34 : vector<1x64xf32> to vector<64x64xf32>
    %36 = arith.addf %33, %35 : vector<64x64xf32>
    %cst_14 = arith.constant 0.000000e+00 : f32
    %37 = vector.broadcast %cst_14 : f32 to vector<64x64xf32>
    %38 = arith.maximumf %36, %37 : vector<64x64xf32>
    %39 = tpu.iota {dimensions = array<i32: 1>} : vector<8x64xi32>
    %40 = tpu.iota {dimensions = array<i32: 0>} : vector<8x64xi32>
    %c8_i32 = arith.constant 8 : i32
    %41 = vector.broadcast %c8_i32 : i32 to vector<8x64xi32>
    %42 = arith.muli %40, %41 : vector<8x64xi32>
    %43 = arith.subi %39, %42 : vector<8x64xi32>
    %c0_i32 = arith.constant 0 : i32
    %44 = vector.broadcast %c0_i32 : i32 to vector<8x64xi32>
    %45 = arith.cmpi sge, %43, %44 : vector<8x64xi32>
    %c4_i32 = arith.constant 4 : i32
    %46 = vector.broadcast %c4_i32 : i32 to vector<8x64xi32>
    %47 = arith.cmpi slt, %43, %46 : vector<8x64xi32>
    %48 = arith.andi %45, %47 : vector<8x64xi1>
    %cst_15 = arith.constant 2.500000e-01 : f32
    %cst_16 = arith.constant 0.000000e+00 : f32
    %49 = vector.broadcast %cst_15 : f32 to vector<8x64xf32>
    %50 = vector.broadcast %cst_16 : f32 to vector<8x64xf32>
    %51 = arith.select %48, %49, %50 : vector<8x64xi1>, vector<8x64xf32>
    %cst_17 = arith.constant dense<0.000000e+00> : vector<8x64xf32>
    %52 = tpu.matmul %51, %38, %cst_17 {dimension_numbers = #tpu.dot_dimension_numbers<[1], [0], [0], [1], [0, 0, 1, 1], [], []>} : vector<8x64xf32>, vector<64x64xf32>, vector<8x64xf32> -> vector<8x64xf32>
    %c280 = arith.constant 280 : index
    %c0_18 = arith.constant 0 : index
    %53 = vector.load %arg3[%c280, %c0_18] : memref<592x128xf32, #tpu.memory_space<vmem>>, vector<64x128xf32>
    %cst_19 = arith.constant dense<0.000000e+00> : vector<8x128xf32>
    %54 = tpu.matmul %52, %53, %cst_19 {dimension_numbers = #tpu.dot_dimension_numbers<[1], [0], [0], [1], [0, 0, 1, 1], [], []>} : vector<8x64xf32>, vector<64x128xf32>, vector<8x128xf32> -> vector<8x128xf32>
    %c586 = arith.constant 586 : index
    %c0_20 = arith.constant 0 : index
    %55 = vector.load %arg3[%c586, %c0_20] : memref<592x128xf32, #tpu.memory_space<vmem>>, vector<1x128xf32>
    %56 = vector.broadcast %55 : vector<1x128xf32> to vector<8x128xf32>
    %57 = arith.addf %54, %56 : vector<8x128xf32>
    %cst_21 = arith.constant 0.000000e+00 : f32
    %58 = vector.broadcast %cst_21 : f32 to vector<8x128xf32>
    %59 = arith.maximumf %57, %58 : vector<8x128xf32>
    %c344 = arith.constant 344 : index
    %c0_22 = arith.constant 0 : index
    %60 = vector.load %arg3[%c344, %c0_22] : memref<592x128xf32, #tpu.memory_space<vmem>>, vector<128x64xf32>
    %cst_23 = arith.constant dense<0.000000e+00> : vector<8x64xf32>
    %61 = tpu.matmul %59, %60, %cst_23 {dimension_numbers = #tpu.dot_dimension_numbers<[1], [0], [0], [1], [0, 0, 1, 1], [], []>} : vector<8x128xf32>, vector<128x64xf32>, vector<8x64xf32> -> vector<8x64xf32>
    %c587 = arith.constant 587 : index
    %c0_24 = arith.constant 0 : index
    %62 = vector.load %arg3[%c587, %c0_24] : memref<592x128xf32, #tpu.memory_space<vmem>>, vector<1x64xf32>
    %63 = vector.broadcast %62 : vector<1x64xf32> to vector<8x64xf32>
    %64 = arith.addf %61, %63 : vector<8x64xf32>
    %cst_25 = arith.constant 0.000000e+00 : f32
    %65 = vector.broadcast %cst_25 : f32 to vector<8x64xf32>
    %66 = arith.maximumf %64, %65 : vector<8x64xf32>
    %c472 = arith.constant 472 : index
    %c0_26 = arith.constant 0 : index
    %67 = vector.load %arg3[%c472, %c0_26] : memref<592x128xf32, #tpu.memory_space<vmem>>, vector<64x32xf32>
    %cst_27 = arith.constant dense<0.000000e+00> : vector<8x32xf32>
    %68 = tpu.matmul %66, %67, %cst_27 {dimension_numbers = #tpu.dot_dimension_numbers<[1], [0], [0], [1], [0, 0, 1, 1], [], []>} : vector<8x64xf32>, vector<64x32xf32>, vector<8x32xf32> -> vector<8x32xf32>
    %c588 = arith.constant 588 : index
    %c0_28 = arith.constant 0 : index
    %69 = vector.load %arg3[%c588, %c0_28] : memref<592x128xf32, #tpu.memory_space<vmem>>, vector<1x32xf32>
    %70 = vector.broadcast %69 : vector<1x32xf32> to vector<8x32xf32>
    %71 = arith.addf %68, %70 : vector<8x32xf32>
    %72 = vector.extract_strided_slice %71 {offsets = [0, 0], sizes = [8, 16], strides = [1, 1]} : vector<8x32xf32> to vector<8x16xf32>
    %73 = vector.extract_strided_slice %71 {offsets = [0, 16], sizes = [8, 16], strides = [1, 1]} : vector<8x32xf32> to vector<8x16xf32>
    %c0_29 = arith.constant 0 : index
    %c0_30 = arith.constant 0 : index
    %74 = vector.load %arg2[%c0_29, %c0_30] : memref<8x128xf32, #tpu.memory_space<vmem>>, vector<8x128xf32>
    %75 = vector.extract_strided_slice %74 {offsets = [0, 0], sizes = [8, 16], strides = [1, 1]} : vector<8x128xf32> to vector<8x16xf32>
    %cst_31 = arith.constant 5.000000e-01 : f32
    %76 = vector.broadcast %cst_31 : f32 to vector<8x16xf32>
    %77 = arith.mulf %76, %73 : vector<8x16xf32>
    %78 = math.exp %77 : vector<8x16xf32>
    %79 = arith.mulf %75, %78 : vector<8x16xf32>
    %80 = arith.addf %72, %79 : vector<8x16xf32>
    %c536 = arith.constant 536 : index
    %c0_32 = arith.constant 0 : index
    %81 = vector.load %arg3[%c536, %c0_32] : memref<592x128xf32, #tpu.memory_space<vmem>>, vector<16x32xf32>
    %cst_33 = arith.constant dense<0.000000e+00> : vector<8x32xf32>
    %82 = tpu.matmul %80, %81, %cst_33 {dimension_numbers = #tpu.dot_dimension_numbers<[1], [0], [0], [1], [0, 0, 1, 1], [], []>} : vector<8x16xf32>, vector<16x32xf32>, vector<8x32xf32> -> vector<8x32xf32>
    %c589 = arith.constant 589 : index
    %c0_34 = arith.constant 0 : index
    %83 = vector.load %arg3[%c589, %c0_34] : memref<592x128xf32, #tpu.memory_space<vmem>>, vector<1x32xf32>
    %84 = vector.broadcast %83 : vector<1x32xf32> to vector<8x32xf32>
    %85 = arith.addf %82, %84 : vector<8x32xf32>
    %cst_35 = arith.constant 0.000000e+00 : f32
    %86 = vector.broadcast %cst_35 : f32 to vector<8x32xf32>
    %87 = arith.maximumf %85, %86 : vector<8x32xf32>
    %c552 = arith.constant 552 : index
    %c0_36 = arith.constant 0 : index
    %88 = vector.load %arg3[%c552, %c0_36] : memref<592x128xf32, #tpu.memory_space<vmem>>, vector<32x96xf32>
    %cst_37 = arith.constant dense<0.000000e+00> : vector<8x96xf32>
    %89 = tpu.matmul %87, %88, %cst_37 {dimension_numbers = #tpu.dot_dimension_numbers<[1], [0], [0], [1], [0, 0, 1, 1], [], []>} : vector<8x32xf32>, vector<32x96xf32>, vector<8x96xf32> -> vector<8x96xf32>
    %c590 = arith.constant 590 : index
    %c0_38 = arith.constant 0 : index
    %90 = vector.load %arg3[%c590, %c0_38] : memref<592x128xf32, #tpu.memory_space<vmem>>, vector<1x96xf32>
    %91 = vector.broadcast %90 : vector<1x96xf32> to vector<8x96xf32>
    %92 = arith.addf %89, %91 : vector<8x96xf32>
    %93 = tpu.concatenate %71, %92 in 1 : vector<8x32xf32>, vector<8x96xf32> -> vector<8x128xf32>
    %c0_39 = arith.constant 0 : index
    %c0_40 = arith.constant 0 : index
    %94 = vector.load %arg4[%c0_39, %c0_40] : memref<8x128xf32, #tpu.memory_space<vmem>>, vector<8x128xf32>
    tpu.vector_store %arg4[%c0_39, %c0_40], %93 {strides = array<i32>} : memref<8x128xf32, #tpu.memory_space<vmem>>, vector<8x128xf32>,
    return
  }
  func.func @transform_0(%arg0: i32) -> (i32, i32) {
    %c0_i32 = arith.constant 0 : i32
    %c0_i32_0 = arith.constant 0 : i32
    return %arg0, %c0_i32 : i32, i32
  }
  func.func @transform_1(%arg0: i32) -> (i32, i32) {
    %c0_i32 = arith.constant 0 : i32
    %c0_i32_0 = arith.constant 0 : i32
    return %arg0, %c0_i32 : i32, i32
  }
  func.func @transform_2(%arg0: i32) -> (i32, i32) {
    %c0_i32 = arith.constant 0 : i32
    %c0_i32_0 = arith.constant 0 : i32
    %c0_i32_1 = arith.constant 0 : i32
    return %c0_i32, %c0_i32_0 : i32, i32
  }
  func.func @transform_3(%arg0: i32) -> (i32, i32) {
    %c0_i32 = arith.constant 0 : i32
    %c0_i32_0 = arith.constant 0 : i32
    return %arg0, %c0_i32 : i32, i32
  }
}

</mosaic_0001>

<bundles_post_ra>
// kernel: tpu_custom_call.1
= control target key start
LH: loop header
LB: loop body
LE: loop exit
PB: predicated region body
PF: predicated region fallthrough
CT: control target
= control target key end

     0   :  { %8 = vsyncpa [#allocation3], 0  ;;  %s2218_s0 = inlined_call_operand.vmem [shape: f32[64,8], index: 0, kind: input, shape index: {}]   ;;  %s2219_s1 = inlined_call_operand.vmem [shape: f32[8,128], index: 1, kind: input, shape index: {}]   ;;  %s2220_s2 = inlined_call_operand.hbm [shape: f32[592,128], index: 2, kind: input, shape index: {}]   ;;  %s2221_s3 = inlined_call_operand.hbm [shape: f32[8,128], index: 3, kind: output, shape index: {}]  }
   0x1   :  { %9 = vsyncpa [#allocation4], 0  ;;  %s1981_s12 = smov [#allocation2]   ;;  %s1933_s16 = scalar_lea.hbm %s2220_s2, 9472 }
   0x2   :  { %s19_s13 = sshll.u32 %s1981_s12, 4  ;;  %p1934_p0 = scmp.ne.s32.totalorder %s2220_s2, %s1933_s16  ;;  %s20_s13 = int_to_ptr.vmem [resolvable:$true] %s19_s13 }
   0x3   :  { %p1937_p1 = scmp.lt.u32.totalorder %s1933_s16, %s2220_s2 }
   0x5   :  { %p1939_p2 = pnand %p1937_p1, %p1934_p0 }
   0x7   :  { %1942 = shalt.err (!%p1939_p2)
}
   0x8   :  { %s1943_s21 = scalar_lea.vmem %s20_s13, 9472  ;;  %p1948_p4 = scmp.lt.s32.totalorder %s20_s13, %s20_s13 }
   0x9   :  { %p1944_p3 = scmp.ne.s32.totalorder %s20_s13, %s1943_s21  ;;  %p1949_p5 = scmp.lt.s32.totalorder %s1943_s21, %s1943_s21 }
   0xb   :  { %p1950_p6 = por %p1949_p5, %p1948_p4 }
   0xd   :  { %p1951_p7 = pnand %p1950_p6, %p1944_p3 }
   0xf   :  { %1954 = shalt.err (!%p1951_p7)
}
  0x10   :  { %s1982_s22 = smov 128   ;;  %s1983_s23 = smov 8  }
  0x11   :  { %25 = dma.hbm_to_vmem [thread:$0]  %s2220_s2, 9472, %s20_s13, [#allocation3], %s1982_s22, %s1982_s22, %s1983_s23  }
  0x12   :  { %1977 = dma.done.wait [#allocation3], 9472  }
  0x13   :  { %1978 = vsyncadd [#allocation3], 4294957824  ;;  %vm39_vm0 = vcmask 64512   ;;  %v38_v0 = vld [vmem:[#allocation2 + $0x8] sm:$0xff]  ;;  %v169_v1 = vld [vmem:[#allocation2 + $0x10] sm:$0xff]  ;;  %vm283_vm1 = vcmask 1046528  }
  0x14   :  { %v29_v2 = vld [vmem:[%s2218_s0] sm:$0xff]  ;;  %1548 = vmatprep.subr.mxu0 %v38_v0  ;;  %1562 = vmatprep.subr.mxu1 %v169_v1  ;;  %v30_v3 = vld [vmem:[%s2218_s0 + $0x8] sm:$0xff]  ;;  %v31_v5 = vld [vmem:[%s2218_s0 + $0x10] sm:$0xff]  ;;  %vm422_vm2 = vcmask 1045504   ;;  %vm1986_vm3 = vmmov 0   ;;  %vm850_vm7 = vcmask 523264  }
  0x15   :  { %1549 = vmatpush3.msra.mxu0 %v38_v0  ;;  %1550 = vmatprep.mubr.msk.f32.mxu0 %vm39_vm0, %v29_v2  ;;  %v37_v4 = vld [vmem:[#allocation2] sm:$0xff]  ;;  %v477_v6 = vld [vmem:[#allocation2 + $0x18] sm:$0xff]  ;;  %v32_v10 = vld [vmem:[%s2218_s0 + $0x18] sm:$0xff]  ;;  %s1988_s14 = smov 112   ;;  %vm1206_vm8 = vcmask 130048   ;;  %vm1290_vm9 = vcmask 261120  }
  0x16   :  { %1563 = vmatpush3.msra.mxu1 %v169_v1  ;;  %1564 = vmatprep.mubr.msk.f32.mxu1 %vm39_vm0, %v29_v2  ;;  %v478_v7 = vld [vmem:[#allocation2 + $0x20] sm:$0xff]  ;;  %v598_v8 = vld [vmem:[#allocation2 + $0x98] sm:$0xff]  ;;  %v479_v13 = vld [vmem:[#allocation2 + $0x28] sm:$0xff]  ;;  %s1990_s17 = smov [#allocation5]  }
  0x17   :  { %1551 = vmatmul.mubr.msk.f32.vlgmr.msra.gmra.mrb[0].mxu0 %vm39_vm0, %v30_v3  ;;  %1565 = vmatmul.mubr.msk.f32.vlgmr.msra.gmra.mrb[0].mxu1 %vm39_vm0, %v30_v3  ;;  %v599_v9 = vld [vmem:[#allocation2 + $0xa0] sm:$0xff]  ;;  %v1788_v11 = vpack.c.bf16 %v478_v7, %v477_v6  ;;  %v480_v14 = vld [vmem:[#allocation2 + $0x30] sm:$0xff]  ;;  %v33_v15 = vld [vmem:[%s2218_s0 + $0x20] sm:$0xff]  ;;  %s1376_s18 = sshll.u32 %s1990_s17, 4  ;;  %s1377_s18 = int_to_ptr.vmem [resolvable:$true] %s1376_s18 }
  0x18   :  { %1576 = vmatprep.subr.mxu0 %v37_v4  ;;  %1553 = vmatprep.mubr.msk.f32.mxu0 %vm39_vm0, %v31_v5  ;;  %v1820_v12 = vpack.c.bf16 %v599_v9, %v598_v8  ;;  %v1792_v16 = vpack.c.bf16 %v480_v14, %v479_v13  ;;  %v34_v17 = vld [vmem:[%s2218_s0 + $0x28] sm:$0xff]  ;;  %v35_v18 = vld [vmem:[%s2218_s0 + $0x30] sm:$0xff]  ;;  %v36_v19 = vld [vmem:[%s2218_s0 + $0x38] sm:$0xff]  ;;  %s1984_s0 = smov 64   ;;  %s1955_s19 = scalar_lea.vmem %s1377_s18, 128 }
  0x19   :  { %1577 = vmatpush3.msra.mxu0 %v37_v4  ;;  %1567 = vmatprep.mubr.msk.f32.mxu1 %vm39_vm0, %v31_v5  ;;  %v600_v20 = vld [vmem:[#allocation2 + $0xa8] sm:$0xff]  ;;  %v601_v21 = vld [vmem:[#allocation2 + $0xb0] sm:$0xff]  ;;  %v481_v23 = vld [vmem:[#allocation2 + $0x38] sm:$0xff]  ;;  %p1956_p8 = scmp.ne.s32.totalorder %s1377_s18, %s1955_s19  ;;  %p1960_p9 = scmp.lt.s32.totalorder %s1377_s18, %s1377_s18 }
  0x1a   :  { %1789 = vmatprep.subr.bf16.mxu1 %v1788_v11  ;;  %1821 = vmatprep.subr.bf16.mxu0 %v1820_v12  ;;  %v1824_v22 = vpack.c.bf16 %v601_v21, %v600_v20  ;;  %v482_v24 = vld [vmem:[#allocation2 + $0x40] sm:$0xff]  ;;  %v602_v25 = vld [vmem:[#allocation2 + $0xb8] sm:$0xff]  ;;  %v483_v29 = vld [vmem:[#allocation2 + $0x48] sm:$0xff]  ;;  %p1961_p10 = scmp.lt.s32.totalorder %s1955_s19, %s1955_s19 }
  0x1b   :  { %1554 = vmatmul.mubr.msk.f32.gmra.mrb[2].mxu0 %vm39_vm0, %v32_v10  ;;  %1568 = vmatmul.mubr.msk.f32.gmra.mrb[2].mxu1 %vm39_vm0, %v32_v10  ;;  %v1796_v26 = vpack.c.bf16 %v482_v24, %v481_v23  ;;  %v603_v27 = vld [vmem:[#allocation2 + $0xc0] sm:$0xff]  ;;  %v484_v30 = vld [vmem:[#allocation2 + $0x50] sm:$0xff]  ;;  %v604_v31 = vld [vmem:[#allocation2 + $0xc8] sm:$0xff] }
  0x1c   :  { %1556 = vmatprep.mubr.msk.f32.mxu0 %vm39_vm0, %v33_v15  ;;  %1570 = vmatprep.mubr.msk.f32.mxu1 %vm39_vm0, %v33_v15  ;;  %v1828_v28 = vpack.c.bf16 %v603_v27, %v602_v25  ;;  %v1800_v32 = vpack.c.bf16 %v484_v30, %v483_v29  ;;  %v605_v33 = vld [vmem:[#allocation2 + $0xd0] sm:$0xff]  ;;  %v485_v35 = vld [vmem:[#allocation2 + $0x58] sm:$0xff]  ;;  %v486_v36 = vld [vmem:[#allocation2 + $0x60] sm:$0xff]  ;;  %p1962_p11 = por %p1961_p10, %p1960_p9 }
  0x1d   :  { %1791 = vmatpush3.bf16.msra.mxu1 %v1788_v11  ;;  %v1832_v34 = vpack.c.bf16 %v605_v33, %v604_v31  ;;  %v606_v37 = vld [vmem:[#allocation2 + $0xd8] sm:$0xff]  ;;  %v1804_v38 = vpack.c.bf16 %v486_v36, %v485_v35  ;;  %v607_v39 = vld [vmem:[#allocation2 + $0xe0] sm:$0xff]  ;;  %v487_v41 = vld [vmem:[#allocation2 + $0x68] sm:$0xff] }
  0x1e   :  { %1793 = vmatprep.subr.bf16.mxu1 %v1792_v16  ;;  %v1836_v40 = vpack.c.bf16 %v607_v39, %v606_v37  ;;  %v488_v42 = vld [vmem:[#allocation2 + $0x70] sm:$0xff]  ;;  %v608_v43 = vld [vmem:[#allocation2 + $0xe8] sm:$0xff]  ;;  %v489_v47 = vld [vmem:[#allocation2 + $0x78] sm:$0xff]  ;;  %p1963_p12 = pnand %p1962_p11, %p1956_p8 }
  0x1f   :  { %1557 = vmatmul.mubr.msk.f32.gmra.mrb[4].mxu0 %vm39_vm0, %v34_v17  ;;  %1571 = vmatmul.mubr.msk.f32.gmra.mrb[4].mxu1 %vm39_vm0, %v34_v17  ;;  %v1808_v44 = vpack.c.bf16 %v488_v42, %v487_v41  ;;  %v609_v45 = vld [vmem:[#allocation2 + $0xf0] sm:$0xff]  ;;  %v490_v48 = vld [vmem:[#allocation2 + $0x80] sm:$0xff]  ;;  %v610_v49 = vld [vmem:[#allocation2 + $0xf8] sm:$0xff] }
  0x20   :  { %1559 = vmatprep.mubr.msk.f32.mxu0 %vm39_vm0, %v35_v18  ;;  %1573 = vmatprep.mubr.msk.f32.mxu1 %vm39_vm0, %v35_v18  ;;  %v1840_v46 = vpack.c.bf16 %v609_v45, %v608_v43  ;;  %v1812_v50 = vpack.c.bf16 %v490_v48, %v489_v47  ;;  %v611_v51 = vld [vmem:[#allocation2 + $0x100] sm:$0xff]  ;;  %v491_v53 = vld [vmem:[#allocation2 + $0x88] sm:$0xff]  ;;  %v492_v54 = vld [vmem:[#allocation2 + $0x90] sm:$0xff] }
  0x21   :  { %1795 = vmatpush3.bf16.msra.mxu1 %v1792_v16  ;;  %v1844_v52 = vpack.c.bf16 %v611_v51, %v610_v49  ;;  %v612_v55 = vld [vmem:[#allocation2 + $0x108] sm:$0xff]  ;;  %v1816_v56 = vpack.c.bf16 %v492_v54, %v491_v53  ;;  %v613_v57 = vld [vmem:[#allocation2 + $0x110] sm:$0xff] }
  0x22   :  { %1797 = vmatprep.subr.bf16.mxu1 %v1796_v26  ;;  %v1848_v58 = vpack.c.bf16 %v613_v57, %v612_v55 }
  0x23   :  { %1560 = vmatmul.mubr.msk.f32.gmra.mrb[6].mxu0 %vm39_vm0, %v36_v19  ;;  %1574 = vmatmul.mubr.msk.f32.gmra.mrb[6].mxu1 %vm39_vm0, %v36_v19 }
  0x24   :  { %1578 = vmatprep.mubr.msk.f32.mxu0 %vm39_vm0, %v29_v2 }
  0x25   :  { %1799 = vmatpush3.bf16.msra.mxu1 %v1796_v26 }
  0x26   :  { %1801 = vmatprep.subr.bf16.mxu1 %v1800_v32 }
  0x27   :  { %1579 = vmatmul.mubr.msk.f32.vlgmr.msra.gmra.mrb[8].mxu0 %vm39_vm0, %v30_v3 }
  0x28   :  { %1581 = vmatprep.mubr.msk.f32.mxu0 %vm39_vm0, %v31_v5  ;;  %1823 = vmatpush3.bf16.msra.mxu0 %v1820_v12 }
  0x29   :  { %1825 = vmatprep.subr.bf16.mxu0 %v1824_v22  ;;  %1803 = vmatpush3.bf16.msra.mxu1 %v1800_v32 }
  0x2a   :  { %1805 = vmatprep.subr.bf16.mxu1 %v1804_v38 }
  0x2b   :  { %1582 = vmatmul.mubr.msk.f32.gmra.mrb[10].mxu0 %vm39_vm0, %v32_v10 }
  0x2c   :  { %1584 = vmatprep.mubr.msk.f32.mxu0 %vm39_vm0, %v33_v15  ;;  %1827 = vmatpush3.bf16.msra.mxu0 %v1824_v22 }
  0x2d   :  { %1829 = vmatprep.subr.bf16.mxu0 %v1828_v28  ;;  %1807 = vmatpush3.bf16.msra.mxu1 %v1804_v38 }
  0x2e   :  { %1809 = vmatprep.subr.bf16.mxu1 %v1808_v44 }
  0x2f   :  { %1585 = vmatmul.mubr.msk.f32.gmra.mrb[12].mxu0 %vm39_vm0, %v34_v17 }
  0x30   :  { %1587 = vmatprep.mubr.msk.f32.mxu0 %vm39_vm0, %v35_v18  ;;  %1831 = vmatpush3.bf16.msra.mxu0 %v1828_v28 }
  0x31   :  { %1833 = vmatprep.subr.bf16.mxu0 %v1832_v34  ;;  %1811 = vmatpush3.bf16.msra.mxu1 %v1808_v44 }
  0x32   :  { %1813 = vmatprep.subr.bf16.mxu1 %v1812_v50 }
  0x33   :  { %1588 = vmatmul.mubr.msk.f32.gmra.mrb[14].mxu0 %vm39_vm0, %v36_v19 }
  0x34   :  { %1835 = vmatpush3.bf16.msra.mxu0 %v1832_v34 }
  0x35   :  { %1837 = vmatprep.subr.bf16.mxu0 %v1836_v40  ;;  %1815 = vmatpush3.bf16.msra.mxu1 %v1812_v50 }
  0x36   :  { %1817 = vmatprep.subr.bf16.mxu1 %v1816_v56 }
  0x38   :  { %1839 = vmatpush3.bf16.msra.mxu0 %v1836_v40 }
  0x39   :  { %1841 = vmatprep.subr.bf16.mxu0 %v1840_v46  ;;  %1819 = vmatpush3.bf16.msra.mxu1 %v1816_v56 }
  0x3c   :  { %1843 = vmatpush3.bf16.msra.mxu0 %v1840_v46  ;;  %v1409_v46 = vld [vmem:[#allocation2 + $0x248] ss:$0 sm:$0xff] }
  0x3d   :  { %1845 = vmatprep.subr.bf16.mxu0 %v1844_v52 }
  0x40   :  { %1847 = vmatpush3.bf16.msra.mxu0 %v1844_v52 }
  0x41   :  { %1849 = vmatprep.subr.bf16.mxu0 %v1848_v58 }
  0x44   :  { %1851 = vmatpush3.bf16.msra.mxu0 %v1848_v58 }
  0xea   :  { %v1552_v59 = vpop.f32.mrb[0].mxu0  ;;  %v1566_v60 = vpop.f32.mrb[0].mxu1 }
  0xeb   :  { %v285_v61 = vrot.slane %v1552_v59, 1  ;;  %v130_v62 = vpop.f32.mrb[1].mxu0  ;;  %v424_v63 = vrot.slane %v1566_v60, 2  ;;  %v236_v0 = vpop.f32.mrb[1].mxu1 }
  0xec   :  { %v284_v1 = vrot.slane %v130_v62, 1  ;;  %v423_v2 = vrot.slane %v236_v0, 2 }
  0xee   :  { %v1555_v3 = vpop.f32.mrb[2].mxu0  ;;  %v1569_v4 = vpop.f32.mrb[2].mxu1  ;;  %v286_v5 = vsel %vm283_vm1, %v284_v1, %v285_v61  ;;  %v425_v6 = vsel %vm422_vm2, %v423_v2, %v424_v63 }
  0xef   :  { %v289_v7 = vrot.slane %v1555_v3, 1  ;;  %v140_v8 = vpop.f32.mrb[3].mxu0  ;;  %v428_v9 = vrot.slane %v1569_v4, 2  ;;  %v246_v10 = vpop.f32.mrb[3].mxu1 }
  0xf0   :  { %v287_v11 = vrot.slane %v140_v8, 1  ;;  %v426_v12 = vrot.slane %v246_v10, 2 }
  0xf2   :  { %v1558_v13 = vpop.f32.mrb[4].mxu0  ;;  %v1572_v14 = vpop.f32.mrb[4].mxu1  ;;  %v288_v15 = vsel %vm283_vm1, %v285_v61, %v287_v11  ;;  %v427_v16 = vsel %vm422_vm2, %v424_v63, %v426_v12  ;;  %v290_v17 = vsel %vm283_vm1, %v287_v11, %v289_v7  ;;  %v429_v18 = vsel %vm422_vm2, %v426_v12, %v428_v9 }
  0xf3   :  { %v293_v19 = vrot.slane %v1558_v13, 1  ;;  %v150_v20 = vpop.f32.mrb[5].mxu0  ;;  %v432_v21 = vrot.slane %v1572_v14, 2  ;;  %v256_v22 = vpop.f32.mrb[5].mxu1 }
  0xf4   :  { %v291_v23 = vrot.slane %v150_v20, 1  ;;  %v430_v24 = vrot.slane %v256_v22, 2 }
  0xf6   :  { %v1561_v25 = vpop.f32.mrb[6].mxu0  ;;  %v1575_v26 = vpop.f32.mrb[6].mxu1  ;;  %v292_v27 = vsel %vm283_vm1, %v289_v7, %v291_v23  ;;  %v431_v28 = vsel %vm422_vm2, %v428_v9, %v430_v24  ;;  %v294_v29 = vsel %vm283_vm1, %v291_v23, %v293_v19  ;;  %v433_v30 = vsel %vm422_vm2, %v430_v24, %v432_v21 }
  0xf7   :  { %v297_v31 = vrot.slane %v1561_v25, 1  ;;  %v436_v32 = vrot.slane %v1575_v26, 2  ;;  %v160_v33 = vpop.f32.mrb[7].mxu0  ;;  %v266_v34 = vpop.f32.mrb[7].mxu1 }
  0xf8   :  { %v295_v35 = vrot.slane %v160_v33, 1  ;;  %v434_v36 = vrot.slane %v266_v34, 2 }
  0xf9   :  { %v308_v37 = vsel %vm283_vm1, %v297_v31, %v284_v1  ;;  %v447_v38 = vsel %vm422_vm2, %v436_v32, %v423_v2 }
  0xfa   :  { %v1580_v39 = vpop.f32.mrb[8].mxu0  ;;  %v296_v40 = vsel %vm283_vm1, %v293_v19, %v295_v35  ;;  %v435_v41 = vsel %vm422_vm2, %v432_v21, %v434_v36  ;;  %v298_v42 = vsel %vm283_vm1, %v295_v35, %v297_v31  ;;  %v437_v43 = vsel %vm422_vm2, %v434_v36, %v436_v32 }
  0xfb   :  { %v381_v44 = vadd.f32 %v1580_v39, %v288_v15  ;;  %v375_v45 = vpop.f32.mrb[9].mxu0 }
  0xfc   :  { %v376_v47 = vadd.f32 %v375_v45, %v286_v5 }
  0xfd   :  { %v449_v48 = vadd.f32 %v427_v16, %v381_v44 }
  0xfe   :  { %v448_v49 = vadd.f32 %v425_v6, %v376_v47  ;;  %v1583_v50 = vpop.f32.mrb[10].mxu0 }
  0xff   :  { %v462_v51 = vadd.f32 %v1409_v46, %v449_v48  ;;  %v391_v52 = vadd.f32 %v1583_v50, %v292_v27  ;;  %v385_v53 = vpop.f32.mrb[11].mxu0 }
 0x100   :  { %v386_v54 = vadd.f32 %v385_v53, %v290_v17  ;;  %v461_v55 = vadd.f32 %v1409_v46, %v448_v49 }
 0x101   :  { %v451_v56 = vadd.f32 %v431_v28, %v391_v52  ;;  %v470_v60 = vmax.f32 %v462_v51, 0.0 }
 0x102   :  { %v450_v57 = vadd.f32 %v429_v18, %v386_v54  ;;  %v1586_v58 = vpop.f32.mrb[12].mxu0  ;;  %v469_v59 = vmax.f32 %v461_v55, 0.0 }
 0x103   :  { %v401_v61 = vadd.f32 %v1586_v58, %v296_v40  ;;  %v395_v62 = vpop.f32.mrb[13].mxu0  ;;  %v464_v63 = vadd.f32 %v1409_v46, %v451_v56 }
 0x104   :  { %v396_v0 = vadd.f32 %v395_v62, %v294_v29  ;;  %1622 = vmatprep.mubr.f32.mxu1 %v469_v59  ;;  %1666 = vmatprep.mubr.f32.mxu0 %v469_v59  ;;  %v463_v1 = vadd.f32 %v1409_v46, %v450_v57 }
 0x105   :  { %v453_v2 = vadd.f32 %v435_v41, %v401_v61  ;;  %1623 = vmatmul.mubr.f32.vlgmr.msra.gmra.mrb[8].mxu1 %v470_v60  ;;  %1667 = vmatmul.mubr.f32.vlgmr.msra.gmra.mrb[16].mxu0 %v470_v60  ;;  %v472_v8 = vmax.f32 %v464_v63, 0.0 }
 0x106   :  { %v452_v3 = vadd.f32 %v433_v30, %v396_v0  ;;  %v1589_v4 = vpop.f32.mrb[14].mxu0  ;;  %v471_v5 = vmax.f32 %v463_v1, 0.0 }
 0x107   :  { %v411_v6 = vadd.f32 %v1589_v4, %v308_v37  ;;  %v405_v7 = vpop.f32.mrb[15].mxu0  ;;  %v466_v9 = vadd.f32 %v1409_v46, %v453_v2 }
 0x108   :  { %v406_v10 = vadd.f32 %v405_v7, %v298_v42  ;;  %1625 = vmatprep.mubr.f32.mxu1 %v471_v5  ;;  %1669 = vmatprep.mubr.f32.mxu0 %v471_v5  ;;  %v465_v11 = vadd.f32 %v1409_v46, %v452_v3  ;;  %v1987_v5 = vmov 0.0   ;;  %v925_v7 = vld [vmem:[#allocation2 + $0x120] sm:$0xff] }
 0x109   :  { %v455_v12 = vadd.f32 %v447_v38, %v411_v6  ;;  %1626 = vmatmul.mubr.f32.gmra.mrb[10].mxu1 %v472_v8  ;;  %1670 = vmatmul.mubr.f32.gmra.mrb[18].mxu0 %v472_v8  ;;  %v474_v15 = vmax.f32 %v466_v9, 0.0  ;;  %v1985_v38 = vmov 0.0|0.0   ;;  %v924_v6 = vld [vmem:[#allocation2 + $0x118] sm:$0xff]  ;;  %v926_v8 = vld [vmem:[#allocation2 + $0x128] sm:$0xff] }
 0x10a   :  { %v454_v13 = vadd.f32 %v437_v43, %v406_v10  ;;  %v473_v14 = vmax.f32 %v465_v11, 0.0  ;;  %1852 = vmatprep.subr.bf16.mxu1 %v1985_v38  ;;  %1864 = vmatprep.subr.bf16.mxu0 %v1985_v38  ;;  %v1865_v9 = vpack.c.bf16 %v925_v7, %v924_v6  ;;  %v927_v10 = vld [vmem:[#allocation2 + $0x130] sm:$0xff] }
 0x10b   :  { %v468_v16 = vadd.f32 %v1409_v46, %v455_v12  ;;  %v1868_v11 = vpack.c.bf16 %v927_v10, %v926_v8  ;;  %v928_v12 = vld [vmem:[#allocation2 + $0x138] sm:$0xff]  ;;  %v1012_v8 = vld [vmem:[#allocation2 + $0x160] sm:$0xff] }
 0x10c   :  { %1628 = vmatprep.mubr.f32.mxu1 %v473_v14  ;;  %1672 = vmatprep.mubr.f32.mxu0 %v473_v14  ;;  %v467_v17 = vadd.f32 %v1409_v46, %v454_v13  ;;  %v929_v13 = vld [vmem:[#allocation2 + $0x140] sm:$0xff] }
 0x10d   :  { %1629 = vmatmul.mubr.f32.gmra.mrb[12].mxu1 %v474_v15  ;;  %1673 = vmatmul.mubr.f32.gmra.mrb[20].mxu0 %v474_v15  ;;  %v476_v19 = vmax.f32 %v468_v16, 0.0  ;;  %v1871_v14 = vpack.c.bf16 %v929_v13, %v928_v12  ;;  %v930_v15 = vld [vmem:[#allocation2 + $0x148] sm:$0xff]  ;;  %v931_v16 = vld [vmem:[#allocation2 + $0x150] sm:$0xff]  ;;  %v1015_v13 = vld [vmem:[#allocation2 + $0x178] sm:$0xff] }
 0x10e   :  { %v475_v18 = vmax.f32 %v467_v17, 0.0  ;;  %1866 = vmatpush3.bf16.msra.mxu0 %v1865_v9  ;;  %v1874_v17 = vpack.c.bf16 %v931_v16, %v930_v15  ;;  %v1013_v9 = vld [vmem:[#allocation2 + $0x168] sm:$0xff] }
 0x10f   :  { %1867 = vmatprep.subr.bf16.mxu0 %v1985_v38  ;;  %v1017_v16 = vld [vmem:[#allocation2 + $0x188] sm:$0xff] }
 0x110   :  { %1631 = vmatprep.mubr.f32.mxu1 %v475_v18  ;;  %1675 = vmatprep.mubr.f32.mxu0 %v475_v18 }
 0x111   :  { %1632 = vmatmul.mubr.f32.gmra.mrb[14].mxu1 %v476_v19  ;;  %1676 = vmatmul.mubr.f32.gmra.mrb[22].mxu0 %v476_v19 }
 0x112   :  { %1694 = vmatprep.mubr.msk.f32.mxu1 %vm1986_vm3, %v1987_v5  ;;  %1713 = vmatprep.mubr.msk.f32.mxu0 %vm1986_vm3, %v1987_v5 }
 0x113   :  { %1869 = vmatpush3.bf16.msra.mxu0 %v1868_v11  ;;  %v1014_v11 = vld [vmem:[#allocation2 + $0x170] sm:$0xff] }
 0x114   :  { %1870 = vmatprep.subr.bf16.mxu0 %v1985_v38  ;;  %v1880_v12 = vpack.c.bf16 %v1014_v11, %v1013_v9  ;;  %v1283_v9 = vld [vmem:[#allocation2 + $0x238] sm:$0xff] }
 0x117   :  { %1872 = vmatpush3.bf16.msra.mxu0 %v1871_v14  ;;  %v1016_v14 = vld [vmem:[#allocation2 + $0x180] sm:$0xff] }
 0x118   :  { %1873 = vmatprep.subr.bf16.mxu0 %v1985_v38  ;;  %v1883_v15 = vpack.c.bf16 %v1016_v14, %v1015_v13 }
 0x11b   :  { %1875 = vmatpush3.bf16.msra.mxu0 %v1874_v17  ;;  %v1018_v17 = vld [vmem:[#allocation2 + $0x190] sm:$0xff] }
 0x11c   :  { %1900 = vmatprep.subr.bf16.mxu0 %v1985_v38 }
 0x1d8   :  { %v2087_v20 = vpop.f32.mrb[8].mxu1  ;;  %v1668_v21 = vpop.f32.mrb[16].mxu0 }
 0x1d9   :  { %v728_v22 = vrot.slane %v2087_v20, 1  ;;  %v787_v23 = vrot.slane %v1668_v21, 2  ;;  %v2090_v24 = vpop.f32.mrb[9].mxu1  ;;  %v680_v25 = vpop.f32.mrb[17].mxu0  ;;  %v1410_v21 = vld [vmem:[#allocation2 + $0x249] ss:$0 sm:$0xff] }
 0x1da   :  { %v727_v26 = vrot.slane %v2090_v24, 1  ;;  %v786_v27 = vrot.slane %v680_v25, 2 }
 0x1dc   :  { %v2093_v28 = vpop.f32.mrb[10].mxu1  ;;  %v1671_v29 = vpop.f32.mrb[18].mxu0  ;;  %v729_v30 = vsel %vm283_vm1, %v727_v26, %v728_v22  ;;  %v2097_v31 = vsel %vm422_vm2, %v786_v27, %v787_v23 }
 0x1dd   :  { %v732_v32 = vrot.slane %v2093_v28, 1  ;;  %v791_v33 = vrot.slane %v1671_v29, 2  ;;  %v690_v34 = vpop.f32.mrb[19].mxu0  ;;  %746 = vrot.lane.b32.xlu0 %v729_v30, %s1984_s0  ;;  %v2101_v35 = vpop.f32.mrb[11].mxu1  ;;  %v840_v30 = vlaneseq }
 0x1de   :  { %v789_v36 = vrot.slane %v690_v34, 2  ;;  %v730_v37 = vrot.slane %v2101_v35, 1 }
 0x1e0   :  { %v2106_v39 = vpop.f32.mrb[12].mxu1  ;;  %v1674_v40 = vpop.f32.mrb[20].mxu0  ;;  %v733_v41 = vsel %vm283_vm1, %v730_v37, %v732_v32  ;;  %v731_v42 = vsel %vm283_vm1, %v728_v22, %v730_v37  ;;  %v2111_v43 = vsel %vm422_vm2, %v789_v36, %v791_v33  ;;  %v2114_v44 = vsel %vm422_vm2, %v787_v23, %v789_v36 }
 0x1e1   :  { %v736_v45 = vrot.slane %v2106_v39, 1  ;;  %v795_v46 = vrot.slane %v1674_v40, 2  ;;  %750 = vrot.lane.b32.xlu1 %v733_v41, %s1984_s0  ;;  %748 = vrot.lane.b32.xlu0 %v731_v42, %s1984_s0  ;;  %v2119_v47 = vpop.f32.mrb[13].mxu1  ;;  %v700_v48 = vpop.f32.mrb[21].mxu0  ;;  %v843_v41 = vshrl.u32 %v840_v30, 7 }
 0x1e2   :  { %v734_v49 = vrot.slane %v2119_v47, 1  ;;  %v793_v50 = vrot.slane %v700_v48, 2 }
 0x1e4   :  { %v2122_v51 = vpop.f32.mrb[14].mxu1  ;;  %v1677_v52 = vpop.f32.mrb[22].mxu0  ;;  %v737_v53 = vsel %vm283_vm1, %v734_v49, %v736_v45  ;;  %v735_v54 = vsel %vm283_vm1, %v732_v32, %v734_v49  ;;  %v2127_v55 = vsel %vm422_vm2, %v793_v50, %v795_v46  ;;  %v2130_v56 = vsel %vm422_vm2, %v791_v33, %v793_v50 }
 0x1e5   :  { %v740_v57 = vrot.slane %v2122_v51, 1  ;;  %v799_v58 = vrot.slane %v1677_v52, 2  ;;  %v710_v59 = vpop.f32.mrb[23].mxu0  ;;  %754 = vrot.lane.b32.xlu0 %v737_v53, %s1984_s0  ;;  %752 = vrot.lane.b32.xlu1 %v735_v54, %s1984_s0  ;;  %v2135_v60 = vpop.f32.mrb[15].mxu1  ;;  %v841_v52 = vand.u32 127, %v840_v30 }
 0x1e6   :  { %v797_v61 = vrot.slane %v710_v59, 2  ;;  %v738_v62 = vrot.slane %v2135_v60, 1 }
 0x1e7   :  { %v744_v63 = vsel %vm283_vm1, %v740_v57, %v727_v26  ;;  %v2140_v0 = vsel %vm422_vm2, %v799_v58, %v786_v27 }
 0x1e8   :  { %v741_v1 = vsel %vm283_vm1, %v738_v62, %v740_v57  ;;  %v739_v2 = vsel %vm283_vm1, %v736_v45, %v738_v62  ;;  %v800_v3 = vsel %vm422_vm2, %v797_v61, %v799_v58  ;;  %v2146_v4 = vsel %vm422_vm2, %v795_v46, %v797_v61 }
 0x1e9   :  { %758 = vrot.lane.b32.xlu0 %v741_v1, %s1984_s0  ;;  %756 = vrot.lane.b32.xlu1 %v739_v2, %s1984_s0 }
 0x1ed   :  { %760 = vrot.lane.b32.xlu1 %v744_v63, %s1984_s0 }
 0x24f   :  { %v747_v18 = vpop.permute.xlu0 %746 }
 0x250   :  { %v770_v19 = vadd.f32 %v747_v18, %v2090_v24  ;;  %v1886_v18 = vpack.c.bf16 %v1018_v17, %v1017_v16  ;;  %v1419_v16 = vld [vmem:[#allocation2 + $0x24e] ss:$0 sm:$0xff] }
 0x252   :  { %v811_v22 = vadd.f32 %v2097_v31, %v770_v19  ;;  %v1019_v19 = vld [vmem:[#allocation2 + $0x198] sm:$0xff] }
 0x253   :  { %v751_v23 = vpop.permute.xlu1 %750  ;;  %v749_v25 = vpop.permute.xlu0 %748 }
 0x254   :  { %v772_v26 = vadd.f32 %v751_v23, %v2101_v35  ;;  %v771_v27 = vadd.f32 %v2087_v20, %v749_v25  ;;  %v824_v29 = vadd.f32 %v1410_v21, %v811_v22  ;;  %v1021_v23 = vld [vmem:[#allocation2 + $0x1a8] sm:$0xff]  ;;  %v1022_v25 = vld [vmem:[#allocation2 + $0x1b0] sm:$0xff] }
 0x256   :  { %v813_v32 = vadd.f32 %v2111_v43, %v772_v26  ;;  %v812_v33 = vadd.f32 %v2114_v44, %v771_v27  ;;  %v832_v31 = vmax.f32 %v824_v29, 0.0  ;;  %v1892_v26 = vpack.c.bf16 %v1022_v25, %v1021_v23  ;;  %v1023_v27 = vld [vmem:[#allocation2 + $0x1b8] sm:$0xff]  ;;  %v1024_v29 = vld [vmem:[#allocation2 + $0x1c0] sm:$0xff] }
 0x257   :  { %v755_v34 = vpop.permute.xlu0 %754  ;;  %v753_v36 = vpop.permute.xlu1 %752  ;;  %v1895_v30 = vpack.c.bf16 %v1024_v29, %v1023_v27 }
 0x258   :  { %v825_v37 = vadd.f32 %v1410_v21, %v812_v33  ;;  %v774_v24 = vadd.f32 %v755_v34, %v2119_v47  ;;  %v773_v40 = vadd.f32 %v2093_v28, %v753_v36  ;;  %v826_v42 = vadd.f32 %v1410_v21, %v813_v32  ;;  %v1025_v34 = vld [vmem:[#allocation2 + $0x1c8] sm:$0xff]  ;;  %v1026_v36 = vld [vmem:[#allocation2 + $0x1d0] sm:$0xff] }
 0x259   :  { %v844_v47 = vmul.u32 8, %v843_v41 }
 0x25a   :  { %v833_v45 = vmax.f32 %v825_v37, 0.0  ;;  %v815_v35 = vadd.f32 %v2127_v55, %v774_v24  ;;  %v814_v20 = vadd.f32 %v2130_v56, %v773_v40  ;;  %v834_v53 = vmax.f32 %v826_v42, 0.0  ;;  %v1103_v24 = vld [vmem:[#allocation2 + $0x1d8] sm:$0xff]  ;;  %v1104_v40 = vld [vmem:[#allocation2 + $0x1e0] sm:$0xff]  ;;  %v1106_v42 = vld [vmem:[#allocation2 + $0x1f0] sm:$0xff] }
 0x25b   :  { %v759_v46 = vpop.permute.xlu0 %758  ;;  %v757_v48 = vpop.permute.xlu1 %756  ;;  %v845_v62 = vsub.s32 %v841_v52, %v844_v47  ;;  %v1898_v37 = vpack.c.bf16 %v1026_v36, %v1025_v34  ;;  %v1901_v41 = vpack.c.bf16 %v1104_v40, %v1103_v24  ;;  %v1109_v52 = vld [vmem:[#allocation2 + $0x208] sm:$0xff]  ;;  %v1110_v47 = vld [vmem:[#allocation2 + $0x210] sm:$0xff] }
 0x25c   :  { %v1853_v43 = vpack.c.bf16 %v833_v45, %v832_v31  ;;  %v827_v49 = vadd.f32 %v1410_v21, %v814_v20  ;;  %v776_v44 = vadd.f32 %v759_v46, %v2135_v60  ;;  %v775_v50 = vadd.f32 %v2106_v39, %v757_v48  ;;  %v1105_v31 = vld [vmem:[#allocation2 + $0x1e8] sm:$0xff]  ;;  %v1108_v20 = vld [vmem:[#allocation2 + $0x200] sm:$0xff] }
 0x25d   :  { %v828_v57 = vadd.f32 %v1410_v21, %v815_v35  ;;  %vm846_vm4 = vcmp.ge.s32.totalorder %v845_v62, 0  ;;  %vm847_vm5 = vcmp.lt.s32.totalorder %v845_v62, 4  ;;  %v1904_v45 = vpack.c.bf16 %v1106_v42, %v1105_v31  ;;  %v1107_v35 = vld [vmem:[#allocation2 + $0x1f8] sm:$0xff]  ;;  %v1412_v48 = vld [vmem:[#allocation2 + $0x24a] ss:$0 sm:$0xff] }
 0x25e   :  { %v835_v28 = vmax.f32 %v827_v49, 0.0  ;;  %v817_v54 = vadd.f32 %v800_v3, %v776_v44  ;;  %1854 = vmatpush3.bf16.msra.mxu1 %v1853_v43  ;;  %v816_v58 = vadd.f32 %v2146_v4, %v775_v50  ;;  %vm848_vm6 = vmand %vm846_vm4, %vm847_vm5  ;;  %v1907_v46 = vpack.c.bf16 %v1108_v20, %v1107_v35 }
 0x25f   :  { %v761_v55 = vpop.permute.xlu1 %760  ;;  %1855 = vmatprep.subr.bf16.mxu1 %v1985_v38  ;;  %v836_v63 = vmax.f32 %v828_v57, 0.0 }
 0x260   :  { %v1856_v56 = vpack.c.bf16 %v835_v28, %v834_v53  ;;  %v777_v59 = vadd.f32 %v2122_v51, %v761_v55  ;;  %v829_v61 = vadd.f32 %v1410_v21, %v816_v58  ;;  %v830_v60 = vadd.f32 %v1410_v21, %v817_v54  ;;  %v1414_v28 = vld [vmem:[#allocation2 + $0x24b] ss:$0 sm:$0xff] }
 0x261   :  { %v849_v51 = vsel %vm848_vm6, 0.25, %v1987_v5  ;;  %v1910_v53 = vpack.c.bf16 %v1110_v47, %v1109_v52 }
 0x262   :  { %v818_v39 = vadd.f32 %v2140_v0, %v777_v59  ;;  %1857 = vmatpush3.bf16.msra.mxu1 %v1856_v56  ;;  %v837_v1 = vmax.f32 %v829_v61, 0.0  ;;  %v838_v4 = vmax.f32 %v830_v60, 0.0  ;;  %v1011_v0 = vld [vmem:[#allocation2 + $0x158] sm:$0xff]  ;;  %v1415_v56 = vld [vmem:[#allocation2 + $0x24c] ss:$0 sm:$0xff] }
 0x263   :  { %1858 = vmatprep.subr.bf16.mxu1 %v1985_v38  ;;  %v1877_v10 = vpack.c.bf16 %v1012_v8, %v1011_v0 }
 0x264   :  { %v831_v2 = vadd.f32 %v1410_v21, %v818_v39  ;;  %v1859_v3 = vpack.c.bf16 %v837_v1, %v836_v63  ;;  %v1020_v21 = vld [vmem:[#allocation2 + $0x1a0] sm:$0xff]  ;;  %v1199_v39 = vld [vmem:[#allocation2 + $0x218] sm:$0xff] }
 0x265   :  { %v1889_v22 = vpack.c.bf16 %v1020_v21, %v1019_v19  ;;  %v1200_v63 = vld [vmem:[#allocation2 + $0x220] sm:$0xff] }
 0x266   :  { %v839_v6 = vmax.f32 %v831_v2, 0.0  ;;  %1860 = vmatpush3.bf16.msra.mxu1 %v1859_v3  ;;  %v1913_v1 = vpack.c.bf16 %v1200_v63, %v1199_v39  ;;  %v1281_v3 = vld [vmem:[#allocation2 + $0x228] sm:$0xff] }
 0x267   :  { %1861 = vmatprep.subr.bf16.mxu1 %v1985_v38 }
 0x268   :  { %v1862_v7 = vpack.c.bf16 %v839_v6, %v838_v4  ;;  %v1282_v4 = vld [vmem:[#allocation2 + $0x230] sm:$0xff] }
 0x269   :  { %v1916_v6 = vpack.c.bf16 %v1282_v4, %v1281_v3 }
 0x26a   :  { %1863 = vmatpush3.bf16.msra.mxu1 %v1862_v7 }
 0x26b   :  { %1876 = vmatprep.subr.bf16.mxu1 %v1985_v38 }
 0x26d   :  { %1695 = vmatmul.mubr.msk.f32.vlgmr.msra.gmra.mrb[16].mxu1 %vm850_vm7, %v849_v51 }
 0x26e   :  { %1748 = vmatprep.mubr.msk.f32.mxu1 %vm1986_vm3, %v1987_v5  ;;  %1878 = vmatpush3.bf16.msra.mxu1 %v1877_v10  ;;  %v1284_v10 = vld [vmem:[#allocation2 + $0x240] sm:$0xff] }
 0x26f   :  { %1879 = vmatprep.subr.bf16.mxu1 %v1985_v38  ;;  %v1919_v11 = vpack.c.bf16 %v1284_v10, %v1283_v9 }
 0x272   :  { %1881 = vmatpush3.bf16.msra.mxu1 %v1880_v12  ;;  %v1417_v12 = vld [vmem:[#allocation2 + $0x24d] ss:$0 sm:$0xff] }
 0x273   :  { %1882 = vmatprep.subr.bf16.mxu1 %v1985_v38 }
 0x276   :  { %1884 = vmatpush3.bf16.msra.mxu1 %v1883_v15 }
 0x277   :  { %1885 = vmatprep.subr.bf16.mxu1 %v1985_v38 }
 0x27a   :  { %1887 = vmatpush3.bf16.msra.mxu1 %v1886_v18 }
 0x27b   :  { %1888 = vmatprep.subr.bf16.mxu1 %v1985_v38 }
 0x27e   :  { %1890 = vmatpush3.bf16.msra.mxu1 %v1889_v22 }
 0x27f   :  { %1891 = vmatprep.subr.bf16.mxu1 %v1985_v38 }
 0x282   :  { %1893 = vmatpush3.bf16.msra.mxu1 %v1892_v26 }
 0x283   :  { %1894 = vmatprep.subr.bf16.mxu1 %v1985_v38 }
 0x286   :  { %1896 = vmatpush3.bf16.msra.mxu1 %v1895_v30 }
 0x287   :  { %1897 = vmatprep.subr.bf16.mxu1 %v1985_v38 }
 0x28a   :  { %1899 = vmatpush3.bf16.msra.mxu1 %v1898_v37 }
 0x28b   :  { %1915 = vmatprep.subr.bf16.mxu1 %v1985_v38 }
 0x340   :  { %v920_v32 = vpop.f32.mrb[16].mxu1 }
 0x341   :  { %v1696_v33 = vpop.f32.mrb[17].mxu1  ;;  %1714 = vmatmul.mubr.msk.f32.vlgmr.msra.gmra.mrb[24].mxu0 %vm850_vm7, %v920_v32 }
 0x342   :  { %1767 = vmatprep.mubr.msk.f32.mxu0 %vm1986_vm3, %v1987_v5  ;;  %1902 = vmatpush3.bf16.msra.mxu0 %v1901_v41 }
 0x343   :  { %1903 = vmatprep.subr.bf16.mxu0 %v1985_v38 }
 0x346   :  { %1905 = vmatpush3.bf16.msra.mxu0 %v1904_v45 }
 0x347   :  { %1906 = vmatprep.subr.bf16.mxu0 %v1985_v38 }
 0x34a   :  { %1908 = vmatpush3.bf16.msra.mxu0 %v1907_v46 }
 0x34b   :  { %1909 = vmatprep.subr.bf16.mxu0 %v1985_v38 }
 0x34e   :  { %1911 = vmatpush3.bf16.msra.mxu0 %v1910_v53 }
 0x34f   :  { %1912 = vmatprep.subr.bf16.mxu0 %v1985_v38 }
 0x414   :  { %v1006_v43 = vpop.f32.mrb[24].mxu0 }
 0x415   :  { %v1007_v49 = vadd.f32 %v1412_v48, %v1006_v43  ;;  %v1715_v44 = vpop.f32.mrb[25].mxu0 }
 0x417   :  { %v1010_v50 = vmax.f32 %v1007_v49, 0.0 }
 0x419   :  { %1749 = vmatmul.mubr.f32.vlgmr.msra.gmra.mrb[18].mxu1 %v1010_v50 }
 0x41a   :  { %1785 = vmatprep.mubr.msk.f32.mxu1 %vm1986_vm3, %v1987_v5  ;;  %1917 = vmatpush3.bf16.msra.mxu1 %v1916_v6 }
 0x41b   :  { %1918 = vmatprep.subr.bf16.mxu1 %v1985_v38 }
 0x41e   :  { %1920 = vmatpush3.bf16.msra.mxu1 %v1919_v11 }
 0x4ec   :  { %v1098_v54 = vpop.f32.mrb[18].mxu1 }
 0x4ed   :  { %v1099_v57 = vadd.f32 %v1414_v28, %v1098_v54  ;;  %v1750_v58 = vpop.f32.mrb[19].mxu1 }
 0x4ef   :  { %v1102_v55 = vmax.f32 %v1099_v57, 0.0 }
 0x4f1   :  { %1768 = vmatmul.mubr.msk.f32.vlgmr.msra.gmra.mrb[26].mxu0 %vm850_vm7, %v1102_v55 }
 0x4f2   :  { %1774 = vmatprep.mubr.msk.f32.mxu0 %vm1986_vm3, %v1987_v5  ;;  %1914 = vmatpush3.bf16.msra.mxu0 %v1913_v1  ;;  %v1189_v5 = vld [vmem:[%s2219_s1] sm:$0xff]  ;;  %s1989_s1 = smov 32  }
 0x5c4   :  { %v1185_v59 = vpop.f32.mrb[26].mxu0 }
 0x5c5   :  { %v1186_v61 = vadd.f32 %v1415_v56, %v1185_v59  ;;  %v1769_v62 = vpop.f32.mrb[27].mxu0 }
 0x5c7   :  { %v1190_v60 = vmul.f32 0.5, %v1186_v61 }
 0x5c9   :  { %v1191_v2 = vmul.f32 1.442695, %v1190_v60 }
 0x5cb   :  { %1931 = vpow2.f32 %v1191_v2 }
 0x5d5   :  { %v1932_v7 = vpop.eup %1931 }
 0x5d6   :  { %1194 = vrot.lane.b32.xlu0 %v1932_v7, %s1988_s14 }
 0x648   :  { %v1195_v51 = vpop.permute.xlu0 %1194 }
 0x649   :  { %v1197_v0 = vmul.f32 %v1195_v51, %v1189_v5 }
 0x64b   :  { %v1198_v8 = vadd.f32 %v1197_v0, %v1186_v61 }
 0x64d   :  { %1775 = vmatmul.mubr.msk.f32.vlgmr.msra.gmra.mrb[28].mxu0 %vm1206_vm8, %v1198_v8 }
 0x720   :  { %v1276_v13 = vpop.f32.mrb[28].mxu0 }
 0x721   :  { %v1277_v14 = vadd.f32 %v1417_v12, %v1276_v13  ;;  %v1776_v38 = vpop.f32.mrb[29].mxu0 }
 0x723   :  { %v1280_v15 = vmax.f32 %v1277_v14, 0.0 }
 0x725   :  { %1786 = vmatmul.mubr.msk.f32.vlgmr.msra.gmra.mrb[20].mxu1 %vm1290_vm9, %v1280_v15 }
 0x7f8   :  { %v1360_v17 = vpop.f32.mrb[20].mxu1 }
 0x7f9   :  { %v1361_v18 = vadd.f32 %v1419_v16, %v1360_v17  ;;  %v1787_v19 = vpop.f32.mrb[21].mxu1 }
 0x7fb   :  { %1365 = vrot.lane.b32.xlu1 %v1361_v18, %s1989_s1 }
 0x86d   :  { %v1366_v21 = vpop.permute.xlu1 %1365 }
 0x86e   :  { %v1368_v22 = vsel %vm1290_vm9, %v1186_v61, %v1366_v21 }
 0x86f   :  { %1369 = vst [vmem:[#allocation5] sm:$0xff] %v1368_v22 }
 0x870   :  { %1966 = shalt.err (!%p1963_p12)
}
 0x871   :  { %s1967_s22 = scalar_lea.hbm %s2221_s3, 128 }
 0x872   :  { %p1968_p13 = scmp.ne.s32.totalorder %s2221_s3, %s1967_s22  ;;  %p1971_p0 = scmp.lt.u32.totalorder %s1967_s22, %s2221_s3 }
 0x874   :  { %p1973_p1 = pnand %p1971_p0, %p1968_p13 }
 0x876   :  { %1976 = shalt.err (!%p1973_p1)
}
 0x877   :  { %1379 = dma.vmem_to_hbm [thread:$0]  %s1377_s18, 128, %s2221_s3, [#allocation4]  }
 0x878   :  { %1979 = dma.done.wait [#allocation4], 128  }
 0x879   :  { %1980 = vsyncadd [#allocation4], 4294967168 }
 0x87a   :  { %1383 = vsyncpa [#allocation3], 1 }
 0x87b   :  { %1384 = vsyncpa [#allocation4], 1 }

</bundles_post_ra>
